<compile_context>
chip_gen: v7x
topology: tpu7x:2x2x1
jax: 0.10.0
libtpu: 0.0.40
codegen_flags: <defaults>
</compile_context>

<pallas_src>
import functools
from typing import NamedTuple, Tuple

import jax
import jax.numpy as jnp
from jax.experimental import pallas as pl
from jax.experimental.pallas import tpu as pltpu

_LANE = 128     # lane width: feature dims padded to multiples of this
_SUBLANE = 8    # f32 sublane count: batch tiles are multiples of this


def _round_up(n: int, m: int) -> int:
    return ((n + m - 1) // m) * m


def _gelu_exact(x):
    # Matches torch.nn.GELU() default (exact, erf-based). Kept as the
    # approx_gelu=False fallback; the default path uses the tanh approximation
    # (EUP) per the perf review.
    return 0.5 * x * (1.0 + jax.lax.erf(x * jnp.float32(0.7071067811865476)))


# --------------------------------------------------------------------------- #
# Kernel
# --------------------------------------------------------------------------- #
def _mlp_kernel(*refs, gelu_flags, out_widths, approx_gelu):
    """refs = (x_ref, w0, w1, ..., w_{L-1}, bias_packed, out_ref)."""
    x_ref = refs[0]
    out_ref = refs[-1]
    b_ref = refs[-2]
    w_refs = refs[1:-2]

    # All biases in one tiny (n_layers, max_out_p) block; slice per layer.
    b_all = b_ref[...].astype(jnp.float32)

    h = x_ref[...]  # native dtype straight to the MXU (no eager upcast)
    n_layers = len(gelu_flags)
    for i, apply_gelu in enumerate(gelu_flags):
        w = w_refs[i][...]
        b = b_all[i, :out_widths[i]]
        # MXU matmul with f32 accumulation; bias add / GELU in f32 (VPU/EUP).
        h = jnp.dot(h, w, preferred_element_type=jnp.float32) + b
        if apply_gelu:
            if approx_gelu:
                h = jax.nn.gelu(h, approximate=True)   # tanh -> EUP slot
            else:
                h = _gelu_exact(h)                     # erf -> VALU polynomial
        if i + 1 < n_layers:
            # Keep the next matmul's LHS in the next weight's dtype so bf16
            # weights get a native-rate MXU pass; for f32 this is a no-op.
            h = h.astype(w_refs[i + 1].dtype)
        # TODO(synk): on v6e/v7x with bf16 weights, keep the bias+GELU epilogue
        # packed in bf16 (halves VALU element count); keep f32 on v5e.
    out_ref[...] = h.astype(out_ref.dtype)


# --------------------------------------------------------------------------- #
# Parameter init / one-time packing (padding hoisted out of the forward)
# --------------------------------------------------------------------------- #
def init_linear_blocks(key, input_dim, output_dim, hidden_dim, layers,
                       output_layer=False, dtype=jnp.float32):
    """Parameter init mirroring the PyTorch module's layer stack.

    Weights are returned already transposed to (in_dim, out_dim); biases as
    (out_dim,); plus a per-linear-layer flag saying whether GELU follows it.
    """
    if input_dim <= 0 or output_dim <= 0 or hidden_dim <= 0 or layers < 1:
        raise ValueError("invalid LinearBlocks configuration")

    dims = [(input_dim, hidden_dim)] + [(hidden_dim, hidden_dim)] * (layers - 1)
    gelu_flags = [True] * layers
    if output_layer:
        dims.append((hidden_dim, output_dim))
        gelu_flags.append(False)

    weights, biases = [], []
    for fan_in, fan_out in dims:
        key, wk, bk = jax.random.split(key, 3)
        bound = 1.0 / (fan_in ** 0.5)  # same scale as PyTorch's default init
        weights.append(jax.random.uniform(wk, (fan_in, fan_out), dtype, -bound, bound))
        biases.append(jax.random.uniform(bk, (fan_out,), dtype, -bound, bound))
    return weights, biases, tuple(gelu_flags)


class PackedLinearBlocks(NamedTuple):
    weights: Tuple[jnp.ndarray, ...]   # padded, (in_p, out_p) per layer
    bias: jnp.ndarray                  # (n_layers, max_out_p), zero-padded
    gelu: Tuple[bool, ...]
    real_shapes: Tuple[Tuple[int, int], ...]
    in_dim: int
    out_dim: int
    in_p: int
    out_p: int
    out_widths: Tuple[int, ...]        # padded out dim per layer


def pack_linear_blocks_params(weights, biases, gelu_flags) -> PackedLinearBlocks:
    """Pad feature dims to lane multiples and pack biases — done ONCE."""
    n = len(weights)
    assert n == len(biases) == len(gelu_flags)
    in_dim = int(weights[0].shape[0])
    out_dim = int(weights[-1].shape[1])
    in_p = _round_up(in_dim, _LANE)
    n_p = tuple(_round_up(int(w.shape[1]), _LANE) for w in weights)
    k_p = (in_p,) + n_p[:-1]

    padded_w = []
    real_shapes = []
    for w, kp, np_ in zip(weights, k_p, n_p):
        kw, nw = int(w.shape[0]), int(w.shape[1])
        real_shapes.append((kw, nw))
        if kw != kp or nw != np_:
            w = jnp.pad(w, ((0, kp - kw), (0, np_ - nw)))
        padded_w.append(w)

    max_np = max(n_p)
    dtype = weights[0].dtype
    b_rows = [jnp.pad(b.astype(dtype), (0, max_np - int(b.shape[0])))
              for b in biases]
    b_packed = jnp.stack(b_rows, axis=0)  # (n_layers, max_np)

    return PackedLinearBlocks(
        weights=tuple(padded_w), bias=b_packed,
        gelu=tuple(bool(g) for g in gelu_flags),
        real_shapes=tuple(real_shapes),
        in_dim=in_dim, out_dim=out_dim,
        in_p=in_p, out_p=n_p[-1], out_widths=n_p)


# --------------------------------------------------------------------------- #
# Forward wrapper
# --------------------------------------------------------------------------- #
def _choose_batch_tile(batch: int, block_batch) -> int:
    if block_batch is not None:
        return _round_up(int(block_batch), _SUBLANE)
    b8 = _round_up(batch, _SUBLANE)
    if b8 <= 256:
        # Tiny/small problem: one grid step. Per-step overhead (~0.35us)
        # exceeds this tile's compute, and with resident weights there is
        # nothing left to overlap.
        return b8
    # Medium/large: 128–256-row tiles keep the f32 intermediate in 16–32 vregs
    # (no spills) and give >=4–8 grid steps so each v7x TC gets >=2 pipelined
    # steps (harmless on single-TC v5e/v6e, just deeper pipelining).
    return 256 if batch >= 2048 else 128


def linear_blocks_forward(x, params: PackedLinearBlocks, *,
                          block_batch=None, approx_gelu=True):
    """Fused forward pass of LinearBlocks. x: (batch, input_dim)."""
    batch, in_dim = x.shape
    if in_dim != params.in_dim:
        raise ValueError(f"x feature dim {in_dim} != packed input_dim {params.in_dim}")

    in_p, out_p = params.in_p, params.out_p
    tb = _choose_batch_tile(batch, block_batch)
    batch_p = _round_up(batch, tb)
    grid = batch_p // tb

    x_p = x
    if batch_p != batch or in_p != in_dim:
        x_p = jnp.pad(x, ((0, batch_p - batch), (0, in_p - in_dim)))

    # ---- operands & specs: x streams per tile; weights/biases stay resident
    operands = [x_p]
    in_specs = [pl.BlockSpec((tb, in_p), lambda i: (i, 0))]
    for wp in params.weights:
        operands.append(wp)
        # Constant index_map -> block resident in VMEM across the batch grid.
        # TODO(synk): pipeline_mode=pl.Buffered(1) would halve the resident
        # footprint (no double buffer for a constant block) once validated.
        in_specs.append(pl.BlockSpec(wp.shape, lambda i: (0, 0)))
    operands.append(params.bias)
    in_specs.append(pl.BlockSpec(params.bias.shape, lambda i: (0, 0)))

    kernel = functools.partial(
        _mlp_kernel, gelu_flags=params.gelu, out_widths=params.out_widths,
        approx_gelu=approx_gelu)

    # ---- explicit VMEM budget (v7x: 64 MiB physical; v5e scoped default 16 MiB)
    w_itemsize = params.weights[0].dtype.itemsize
    resident = sum(int(w.size) * w.dtype.itemsize for w in params.weights)
    resident += int(params.bias.size) * params.bias.dtype.itemsize
    resident *= 2                                  # assume double-buffered
    stream = 2 * tb * (in_p + out_p) * x.dtype.itemsize
    widest = max((in_p,) + params.out_widths)
    scratch = 4 * tb * widest * 4                  # f32 intermediates margin
    budget = resident + stream + scratch + (2 << 20)
    vmem_limit = max(int(budget), 8 << 20)
    if vmem_limit > (64 << 20):
        # TODO(synk): per-layer weight streaming / bf16 weight-cast fallback
        # for configs whose resident weights exceed v7x's 64 MiB VMEM.
        raise ValueError(
            f"resident-weight design needs ~{budget >> 20} MiB VMEM which "
            "exceeds v7x's 64 MiB; shrink hidden_dim or stream weights")

    # ---- advisory cost estimate on REAL (unpadded) dims
    flops = 2 * batch * sum(fi * fo for fi, fo in params.real_shapes)
    transcendentals = batch * sum(
        fo for (fi, fo), g in zip(params.real_shapes, params.gelu) if g)
    bytes_accessed = (
        batch * in_dim * x.dtype.itemsize
        + batch * params.out_dim * x.dtype.itemsize
        + sum((fi * fo + fo) * w_itemsize for fi, fo in params.real_shapes))

    out_padded = pl.pallas_call(
        kernel,
        out_shape=jax.ShapeDtypeStruct((batch_p, out_p), x.dtype),
        grid=(grid,),
        in_specs=in_specs,
        out_specs=pl.BlockSpec((tb, out_p), lambda i: (i, 0)),
        compiler_params=pltpu.CompilerParams(
            dimension_semantics=("parallel",),
            vmem_limit_bytes=int(vmem_limit)),
        cost_estimate=pl.CostEstimate(
            flops=int(flops),
            transcendentals=int(transcendentals),
            bytes_accessed=int(bytes_accessed)),
    )(*operands)

    # Padding rows/cols carry exact zeros through every layer; slice them off.
    return out_padded[:batch, :params.out_dim]


# --------------------------------------------------------------------------- #
# Pure-JAX reference
# --------------------------------------------------------------------------- #
def _reference_forward(x, weights, biases, gelu_flags, approximate):
    h = x.astype(jnp.float32)
    for w, b, g in zip(weights, biases, gelu_flags):
        h = h @ w.astype(jnp.float32) + b.astype(jnp.float32)
        if g:
            h = jax.nn.gelu(h, approximate=approximate)
    return h.astype(x.dtype)


if __name__ == "__main__":
    # Module config (small, consistent with LinearBlocks.__init__):
    input_dim, output_dim, hidden_dim, layers = 16, 8, 32, 3
    output_layer = True
    batch = 64  # tiny -> single grid step (tb=64)

    key = jax.random.PRNGKey(0)
    pkey, xkey, xkey2 = jax.random.split(key, 3)

    weights, biases, gelu_flags = init_linear_blocks(
        pkey, input_dim, output_dim, hidden_dim, layers, output_layer)
    packed = pack_linear_blocks_params(weights, biases, gelu_flags)  # once

    x = jax.random.normal(xkey, (batch, input_dim), dtype=jnp.float32)
    out = jax.block_until_ready(linear_blocks_forward(x, packed))
    assert out.shape == (batch, output_dim)

    ref_approx = _reference_forward(x, weights, biases, gelu_flags, approximate=True)
    ref_exact = _reference_forward(x, weights, biases, gelu_flags, approximate=False)
    assert jnp.allclose(out, ref_approx, atol=1e-4, rtol=1e-4)
    # Documents the (intentional) tanh-approx GELU drift vs torch's exact GELU.
    assert jnp.allclose(out, ref_exact, atol=1e-2, rtol=1e-2)

    # Non-divisible batch (padded internally, sliced outside; single step).
    x_odd = jax.random.normal(xkey, (batch - 3, input_dim), dtype=jnp.float32)
    out_odd = jax.block_until_ready(linear_blocks_forward(x_odd, packed))
    ref_odd = _reference_forward(x_odd, weights, biases, gelu_flags, approximate=True)
    assert out_odd.shape == (batch - 3, output_dim)
    assert jnp.allclose(out_odd, ref_odd, atol=1e-4, rtol=1e-4)

    # Larger batch exercising the multi-step pipelined grid (tb=128, grid=3).
    x_big = jax.random.normal(xkey2, (300, input_dim), dtype=jnp.float32)
    out_big = jax.block_until_ready(linear_blocks_forward(x_big, packed))
    ref_big = _reference_forward(x_big, weights, biases, gelu_flags, approximate=True)
    assert out_big.shape == (300, output_dim)
    assert jnp.allclose(out_big, ref_big, atol=1e-4, rtol=1e-4)

    print("KERNEL_OK")
</pallas_src>

<mosaic_0001>
module attributes {stable_mosaic.version = 11 : i64} {
  func.func @_mlp_kernel(%arg0: i32, %arg1: memref<64x128xf32, #tpu.memory_space<vmem>>, %arg2: memref<128x128xf32, #tpu.memory_space<vmem>>, %arg3: memref<128x128xf32, #tpu.memory_space<vmem>>, %arg4: memref<128x128xf32, #tpu.memory_space<vmem>>, %arg5: memref<128x128xf32, #tpu.memory_space<vmem>>, %arg6: memref<4x128xf32, #tpu.memory_space<vmem>>, %arg7: memref<64x128xf32, #tpu.memory_space<vmem>>) attributes {dimension_semantics = [#tpu.dimension_semantics<parallel>], iteration_bounds = array<i64: 1>, scalar_prefetch = 0 : i64, scratch_operands = 0 : i64, tpu.core_type = #tpu.core_type<tc>, window_params = [{transform_indices = @transform_0, window_bounds = array<i64: 64, 128>}, {pipeline_mode = #tpu.pipeline_mode<synchronous>, transform_indices = @transform_1, window_bounds = array<i64: 128, 128>}, {pipeline_mode = #tpu.pipeline_mode<synchronous>, transform_indices = @transform_2, window_bounds = array<i64: 128, 128>}, {pipeline_mode = #tpu.pipeline_mode<synchronous>, transform_indices = @transform_3, window_bounds = array<i64: 128, 128>}, {pipeline_mode = #tpu.pipeline_mode<synchronous>, transform_indices = @transform_4, window_bounds = array<i64: 128, 128>}, {pipeline_mode = #tpu.pipeline_mode<synchronous>, transform_indices = @transform_5, window_bounds = array<i64: 4, 128>}, {transform_indices = @transform_6, window_bounds = array<i64: 64, 128>}]} {
    %c0 = arith.constant 0 : index
    %c0_0 = arith.constant 0 : index
    %0 = vector.load %arg6[%c0, %c0_0] : memref<4x128xf32, #tpu.memory_space<vmem>>, vector<4x128xf32>
    %c0_1 = arith.constant 0 : index
    %c0_2 = arith.constant 0 : index
    %1 = vector.load %arg1[%c0_1, %c0_2] : memref<64x128xf32, #tpu.memory_space<vmem>>, vector<64x128xf32>
    %c0_3 = arith.constant 0 : index
    %c0_4 = arith.constant 0 : index
    %2 = vector.load %arg2[%c0_3, %c0_4] : memref<128x128xf32, #tpu.memory_space<vmem>>, vector<128x128xf32>
    %3 = vector.extract_strided_slice %0 {offsets = [0, 0], sizes = [1, 128], strides = [1, 1]} : vector<4x128xf32> to vector<1x128xf32>
    %4 = vector.shape_cast %3 : vector<1x128xf32> to vector<128xf32>
    %cst = arith.constant dense<0.000000e+00> : vector<64x128xf32>
    %5 = tpu.matmul %1, %2, %cst {dimension_numbers = #tpu.dot_dimension_numbers<[1], [0], [0], [1], [0, 0, 1, 1], [], []>} : vector<64x128xf32>, vector<128x128xf32>, vector<64x128xf32> -> vector<64x128xf32>
    %6 = vector.shape_cast %4 : vector<128xf32> to vector<1x128xf32>
    %7 = vector.broadcast %6 : vector<1x128xf32> to vector<64x128xf32>
    %8 = arith.addf %5, %7 : vector<64x128xf32>
    %9 = arith.mulf %8, %8 : vector<64x128xf32>
    %10 = arith.mulf %8, %9 : vector<64x128xf32>
    %cst_5 = arith.constant 4.471500e-02 : f32
    %11 = vector.broadcast %cst_5 : f32 to vector<64x128xf32>
    %12 = arith.mulf %11, %10 : vector<64x128xf32>
    %13 = arith.addf %8, %12 : vector<64x128xf32>
    %cst_6 = arith.constant 0.797884583 : f32
    %14 = vector.broadcast %cst_6 : f32 to vector<64x128xf32>
    %15 = arith.mulf %14, %13 : vector<64x128xf32>
    %16 = math.tanh %15 : vector<64x128xf32>
    %cst_7 = arith.constant 1.000000e+00 : f32
    %17 = vector.broadcast %cst_7 : f32 to vector<64x128xf32>
    %18 = arith.addf %17, %16 : vector<64x128xf32>
    %cst_8 = arith.constant 5.000000e-01 : f32
    %19 = vector.broadcast %cst_8 : f32 to vector<64x128xf32>
    %20 = arith.mulf %19, %18 : vector<64x128xf32>
    %21 = arith.mulf %8, %20 : vector<64x128xf32>
    %c0_9 = arith.constant 0 : index
    %c0_10 = arith.constant 0 : index
    %22 = vector.load %arg3[%c0_9, %c0_10] : memref<128x128xf32, #tpu.memory_space<vmem>>, vector<128x128xf32>
    %23 = vector.extract_strided_slice %0 {offsets = [1, 0], sizes = [1, 128], strides = [1, 1]} : vector<4x128xf32> to vector<1x128xf32>
    %24 = vector.shape_cast %23 : vector<1x128xf32> to vector<128xf32>
    %cst_11 = arith.constant dense<0.000000e+00> : vector<64x128xf32>
    %25 = tpu.matmul %21, %22, %cst_11 {dimension_numbers = #tpu.dot_dimension_numbers<[1], [0], [0], [1], [0, 0, 1, 1], [], []>} : vector<64x128xf32>, vector<128x128xf32>, vector<64x128xf32> -> vector<64x128xf32>
    %26 = vector.shape_cast %24 : vector<128xf32> to vector<1x128xf32>
    %27 = vector.broadcast %26 : vector<1x128xf32> to vector<64x128xf32>
    %28 = arith.addf %25, %27 : vector<64x128xf32>
    %29 = arith.mulf %28, %28 : vector<64x128xf32>
    %30 = arith.mulf %28, %29 : vector<64x128xf32>
    %cst_12 = arith.constant 4.471500e-02 : f32
    %31 = vector.broadcast %cst_12 : f32 to vector<64x128xf32>
    %32 = arith.mulf %31, %30 : vector<64x128xf32>
    %33 = arith.addf %28, %32 : vector<64x128xf32>
    %cst_13 = arith.constant 0.797884583 : f32
    %34 = vector.broadcast %cst_13 : f32 to vector<64x128xf32>
    %35 = arith.mulf %34, %33 : vector<64x128xf32>
    %36 = math.tanh %35 : vector<64x128xf32>
    %cst_14 = arith.constant 1.000000e+00 : f32
    %37 = vector.broadcast %cst_14 : f32 to vector<64x128xf32>
    %38 = arith.addf %37, %36 : vector<64x128xf32>
    %cst_15 = arith.constant 5.000000e-01 : f32
    %39 = vector.broadcast %cst_15 : f32 to vector<64x128xf32>
    %40 = arith.mulf %39, %38 : vector<64x128xf32>
    %41 = arith.mulf %28, %40 : vector<64x128xf32>
    %c0_16 = arith.constant 0 : index
    %c0_17 = arith.constant 0 : index
    %42 = vector.load %arg4[%c0_16, %c0_17] : memref<128x128xf32, #tpu.memory_space<vmem>>, vector<128x128xf32>
    %43 = vector.extract_strided_slice %0 {offsets = [2, 0], sizes = [1, 128], strides = [1, 1]} : vector<4x128xf32> to vector<1x128xf32>
    %44 = vector.shape_cast %43 : vector<1x128xf32> to vector<128xf32>
    %cst_18 = arith.constant dense<0.000000e+00> : vector<64x128xf32>
    %45 = tpu.matmul %41, %42, %cst_18 {dimension_numbers = #tpu.dot_dimension_numbers<[1], [0], [0], [1], [0, 0, 1, 1], [], []>} : vector<64x128xf32>, vector<128x128xf32>, vector<64x128xf32> -> vector<64x128xf32>
    %46 = vector.shape_cast %44 : vector<128xf32> to vector<1x128xf32>
    %47 = vector.broadcast %46 : vector<1x128xf32> to vector<64x128xf32>
    %48 = arith.addf %45, %47 : vector<64x128xf32>
    %49 = arith.mulf %48, %48 : vector<64x128xf32>
    %50 = arith.mulf %48, %49 : vector<64x128xf32>
    %cst_19 = arith.constant 4.471500e-02 : f32
    %51 = vector.broadcast %cst_19 : f32 to vector<64x128xf32>
    %52 = arith.mulf %51, %50 : vector<64x128xf32>
    %53 = arith.addf %48, %52 : vector<64x128xf32>
    %cst_20 = arith.constant 0.797884583 : f32
    %54 = vector.broadcast %cst_20 : f32 to vector<64x128xf32>
    %55 = arith.mulf %54, %53 : vector<64x128xf32>
    %56 = math.tanh %55 : vector<64x128xf32>
    %cst_21 = arith.constant 1.000000e+00 : f32
    %57 = vector.broadcast %cst_21 : f32 to vector<64x128xf32>
    %58 = arith.addf %57, %56 : vector<64x128xf32>
    %cst_22 = arith.constant 5.000000e-01 : f32
    %59 = vector.broadcast %cst_22 : f32 to vector<64x128xf32>
    %60 = arith.mulf %59, %58 : vector<64x128xf32>
    %61 = arith.mulf %48, %60 : vector<64x128xf32>
    %c0_23 = arith.constant 0 : index
    %c0_24 = arith.constant 0 : index
    %62 = vector.load %arg5[%c0_23, %c0_24] : memref<128x128xf32, #tpu.memory_space<vmem>>, vector<128x128xf32>
    %63 = vector.extract_strided_slice %0 {offsets = [3, 0], sizes = [1, 128], strides = [1, 1]} : vector<4x128xf32> to vector<1x128xf32>
    %64 = vector.shape_cast %63 : vector<1x128xf32> to vector<128xf32>
    %cst_25 = arith.constant dense<0.000000e+00> : vector<64x128xf32>
    %65 = tpu.matmul %61, %62, %cst_25 {dimension_numbers = #tpu.dot_dimension_numbers<[1], [0], [0], [1], [0, 0, 1, 1], [], []>} : vector<64x128xf32>, vector<128x128xf32>, vector<64x128xf32> -> vector<64x128xf32>
    %66 = vector.shape_cast %64 : vector<128xf32> to vector<1x128xf32>
    %67 = vector.broadcast %66 : vector<1x128xf32> to vector<64x128xf32>
    %68 = arith.addf %65, %67 : vector<64x128xf32>
    %c0_26 = arith.constant 0 : index
    %c0_27 = arith.constant 0 : index
    %69 = vector.load %arg7[%c0_26, %c0_27] : memref<64x128xf32, #tpu.memory_space<vmem>>, vector<64x128xf32>
    tpu.vector_store %arg7[%c0_26, %c0_27], %68 {strides = array<i32>} : memref<64x128xf32, #tpu.memory_space<vmem>>, vector<64x128xf32>,
    return
  }
  func.func @transform_0(%arg0: i32) -> (i32, i32) {
    %c0_i32 = arith.constant 0 : i32
    %c0_i32_0 = arith.constant 0 : i32
    return %arg0, %c0_i32 : i32, i32
  }
  func.func @transform_1(%arg0: i32) -> (i32, i32) {
    %c0_i32 = arith.constant 0 : i32
    %c0_i32_0 = arith.constant 0 : i32
    %c0_i32_1 = arith.constant 0 : i32
    return %c0_i32, %c0_i32_0 : i32, i32
  }
  func.func @transform_2(%arg0: i32) -> (i32, i32) {
    %c0_i32 = arith.constant 0 : i32
    %c0_i32_0 = arith.constant 0 : i32
    %c0_i32_1 = arith.constant 0 : i32
    return %c0_i32, %c0_i32_0 : i32, i32
  }
  func.func @transform_3(%arg0: i32) -> (i32, i32) {
    %c0_i32 = arith.constant 0 : i32
    %c0_i32_0 = arith.constant 0 : i32
    %c0_i32_1 = arith.constant 0 : i32
    return %c0_i32, %c0_i32_0 : i32, i32
  }
  func.func @transform_4(%arg0: i32) -> (i32, i32) {
    %c0_i32 = arith.constant 0 : i32
    %c0_i32_0 = arith.constant 0 : i32
    %c0_i32_1 = arith.constant 0 : i32
    return %c0_i32, %c0_i32_0 : i32, i32
  }
  func.func @transform_5(%arg0: i32) -> (i32, i32) {
    %c0_i32 = arith.constant 0 : i32
    %c0_i32_0 = arith.constant 0 : i32
    %c0_i32_1 = arith.constant 0 : i32
    return %c0_i32, %c0_i32_0 : i32, i32
  }
  func.func @transform_6(%arg0: i32) -> (i32, i32) {
    %c0_i32 = arith.constant 0 : i32
    %c0_i32_0 = arith.constant 0 : i32
    return %arg0, %c0_i32 : i32, i32
  }
}

</mosaic_0001>

<bundles_post_ra>
// kernel: tpu_custom_call.1
= control target key start
LH: loop header
LB: loop body
LE: loop exit
PB: predicated region body
PF: predicated region fallthrough
CT: control target
= control target key end

     0   :  { %11 = vsyncpa [#allocation3], 0  ;;  %s1749_s0 = inlined_call_operand.hbm [shape: f32[64,128], index: 0, kind: input, shape index: {}]   ;;  %s1750_s1 = inlined_call_operand.hbm [shape: f32[128,128], index: 1, kind: input, shape index: {}]   ;;  %s1751_s2 = inlined_call_operand.hbm [shape: f32[128,128], index: 2, kind: input, shape index: {}]   ;;  %s1752_s3 = inlined_call_operand.hbm [shape: f32[128,128], index: 3, kind: input, shape index: {}]   ;;  %s1753_s4 = inlined_call_operand.hbm [shape: f32[128,128], index: 4, kind: input, shape index: {}]   ;;  %s1754_s5 = inlined_call_operand.vmem [shape: f32[4,128], index: 5, kind: input, shape index: {}]   ;;  %s1755_s6 = inlined_call_operand.hbm [shape: f32[64,128], index: 6, kind: output, shape index: {}]  }
   0x1   :  { %12 = vsyncpa [#allocation6], 0 }
   0x2   :  { %13 = vsyncpa [#allocation9], 0 }
   0x3   :  { %14 = vsyncpa [#allocation4], 0  ;;  %s1440_s21 = smov [#allocation5]   ;;  %s1441_s23 = smov [#allocation8]  }
   0x4   :  { %s32_s22 = sshll.u32 %s1440_s21, 4  ;;  %s56_s24 = sshll.u32 %s1441_s23, 4  ;;  %s33_s22 = int_to_ptr.vmem [resolvable:$true] %s32_s22  ;;  %s1483_s24 = int_to_ptr.vmem [resolvable:$true] %s56_s24 }
   0x5   :  { %s1300_s27 = scalar_lea.hbm %s1750_s1, 2048 }
   0x6   :  { %p1301_p0 = scmp.ne.s32.totalorder %s1750_s1, %s1300_s27  ;;  %p1304_p1 = scmp.lt.u32.totalorder %s1300_s27, %s1750_s1 }
   0x8   :  { %p1306_p2 = pnand %p1304_p1, %p1301_p0 }
   0xa   :  { %1309 = shalt.err (!%p1306_p2)
}
   0xb   :  { %s1310_s8 = scalar_lea.vmem %s33_s22, 2048  ;;  %p1315_p4 = scmp.lt.s32.totalorder %s33_s22, %s33_s22 }
   0xc   :  { %p1311_p3 = scmp.ne.s32.totalorder %s33_s22, %s1310_s8  ;;  %p1316_p5 = scmp.lt.s32.totalorder %s1310_s8, %s1310_s8 }
   0xe   :  { %p1317_p6 = por %p1316_p5, %p1315_p4 }
  0x10   :  { %p1318_p7 = pnand %p1317_p6, %p1311_p3 }
  0x12   :  { %1321 = shalt.err (!%p1318_p7)
}
  0x13   :  { %s1442_s9 = smov 128   ;;  %s1443_s10 = smov 8  }
  0x14   :  { %38 = dma.hbm_to_vmem [thread:$0]  %s1750_s1, 2048, %s33_s22, [#allocation6], %s1442_s9, %s1442_s9, %s1443_s10  }
  0x15   :  { %s1322_s15 = scalar_lea.hbm %s1752_s3, 2048 }
  0x16   :  { %p1323_p8 = scmp.ne.s32.totalorder %s1752_s3, %s1322_s15  ;;  %p1326_p9 = scmp.lt.u32.totalorder %s1322_s15, %s1752_s3 }
  0x18   :  { %p1328_p10 = pnand %p1326_p9, %p1323_p8 }
  0x1a   :  { %1331 = shalt.err (!%p1328_p10)
}
  0x1b   :  { %s1332_s20 = scalar_lea.vmem %s1483_s24, 2048  ;;  %p1337_p12 = scmp.lt.s32.totalorder %s1483_s24, %s1483_s24 }
  0x1c   :  { %p1333_p11 = scmp.ne.s32.totalorder %s1483_s24, %s1332_s20  ;;  %p1338_p13 = scmp.lt.s32.totalorder %s1332_s20, %s1332_s20 }
  0x1e   :  { %p1339_p0 = por %p1338_p13, %p1337_p12 }
  0x20   :  { %p1340_p1 = pnand %p1339_p0, %p1333_p11 }
  0x22   :  { %1343 = shalt.err (!%p1340_p1)
}
  0x23   :  { %62 = dma.hbm_to_vmem [thread:$0]  %s1752_s3, 2048, %s1483_s24, [#allocation9], %s1442_s9, %s1442_s9, %s1443_s10  }
  0x24   :  { %s1444_s22 = smov [#allocation2]   ;;  %s1445_s25 = smov [#allocation7]  }
  0x25   :  { %s20_s23 = sshll.u32 %s1444_s22, 4  ;;  %s44_s26 = sshll.u32 %s1445_s25, 4  ;;  %s21_s23 = int_to_ptr.vmem [resolvable:$true] %s20_s23  ;;  %s1520_s26 = int_to_ptr.vmem [resolvable:$true] %s44_s26 }
  0x26   :  { %s1344_s29 = scalar_lea.hbm %s1749_s0, 1024 }
  0x27   :  { %p1345_p2 = scmp.ne.s32.totalorder %s1749_s0, %s1344_s29  ;;  %p1348_p3 = scmp.lt.u32.totalorder %s1344_s29, %s1749_s0 }
  0x29   :  { %p1350_p4 = pnand %p1348_p3, %p1345_p2 }
  0x2b   :  { %1353 = shalt.err (!%p1350_p4)
}
  0x2c   :  { %s1354_s3 = scalar_lea.vmem %s21_s23, 1024  ;;  %p1359_p6 = scmp.lt.s32.totalorder %s21_s23, %s21_s23 }
  0x2d   :  { %p1355_p5 = scmp.ne.s32.totalorder %s21_s23, %s1354_s3  ;;  %p1360_p7 = scmp.lt.s32.totalorder %s1354_s3, %s1354_s3 }
  0x2f   :  { %p1361_p8 = por %p1360_p7, %p1359_p6 }
  0x31   :  { %p1362_p9 = pnand %p1361_p8, %p1355_p5 }
  0x33   :  { %1365 = shalt.err (!%p1362_p9)
}
  0x34   :  { %26 = dma.hbm_to_vmem [thread:$0]  %s1749_s0, 1024, %s21_s23, [#allocation3], %s1442_s9, %s1442_s9, %s1443_s10  }
  0x35   :  { %s1366_s15 = scalar_lea.hbm %s1751_s2, 2048 }
  0x36   :  { %p1367_p10 = scmp.ne.s32.totalorder %s1751_s2, %s1366_s15  ;;  %p1370_p11 = scmp.lt.u32.totalorder %s1366_s15, %s1751_s2 }
  0x38   :  { %p1372_p12 = pnand %p1370_p11, %p1367_p10 }
  0x3a   :  { %1375 = shalt.err (!%p1372_p12)
}
  0x3b   :  { %s1376_s20 = scalar_lea.vmem %s1520_s26, 2048  ;;  %p1381_p0 = scmp.lt.s32.totalorder %s1520_s26, %s1520_s26 }
  0x3c   :  { %p1377_p13 = scmp.ne.s32.totalorder %s1520_s26, %s1376_s20  ;;  %p1382_p1 = scmp.lt.s32.totalorder %s1376_s20, %s1376_s20 }
  0x3e   :  { %p1383_p2 = por %p1382_p1, %p1381_p0 }
  0x40   :  { %p1384_p3 = pnand %p1383_p2, %p1377_p13 }
  0x42   :  { %1387 = shalt.err (!%p1384_p3)
}
  0x43   :  { %50 = dma.hbm_to_vmem [thread:$0]  %s1751_s2, 2048, %s1520_s26, [#allocation6], %s1442_s9, %s1442_s9, %s1443_s10  }
  0x44   :  { %s1446_s21 = smov [#allocation10]   ;;  %s1388_s27 = scalar_lea.hbm %s1753_s4, 2048 }
  0x45   :  { %s68_s22 = sshll.u32 %s1446_s21, 4  ;;  %p1389_p4 = scmp.ne.s32.totalorder %s1753_s4, %s1388_s27  ;;  %s69_s22 = int_to_ptr.vmem [resolvable:$true] %s68_s22 }
  0x46   :  { %p1392_p5 = scmp.lt.u32.totalorder %s1388_s27, %s1753_s4 }
  0x48   :  { %p1394_p6 = pnand %p1392_p5, %p1389_p4 }
  0x4a   :  { %1397 = shalt.err (!%p1394_p6)
}
  0x4b   :  { %s1398_s8 = scalar_lea.vmem %s69_s22, 2048  ;;  %p1403_p8 = scmp.lt.s32.totalorder %s69_s22, %s69_s22 }
  0x4c   :  { %p1399_p7 = scmp.ne.s32.totalorder %s69_s22, %s1398_s8  ;;  %p1404_p9 = scmp.lt.s32.totalorder %s1398_s8, %s1398_s8 }
  0x4e   :  { %p1405_p10 = por %p1404_p9, %p1403_p8 }
  0x50   :  { %p1406_p11 = pnand %p1405_p10, %p1399_p7 }
  0x52   :  { %1409 = shalt.err (!%p1406_p11)
}
  0x53   :  { %74 = dma.hbm_to_vmem [thread:$0]  %s1753_s4, 2048, %s69_s22, [#allocation9], %s1442_s9, %s1442_s9, %s1443_s10  }
  0x54   :  { %1432 = dma.done.wait [#allocation3], 1024  }
  0x55   :  { %1433 = vsyncadd [#allocation3], 4294966272 }
  0x56   :  { %1434 = dma.done.wait [#allocation6], 4096  }
  0x57   :  { %1435 = vsyncadd [#allocation6], 4294963200 }
  0x58   :  { %1436 = dma.done.wait [#allocation9], 4096  }
  0x59   :  { %1437 = vsyncadd [#allocation9], 4294963200  ;;  %v101_v0 = vld [vmem:[#allocation5] sm:$0xff]  ;;  %v102_v1 = vld [vmem:[#allocation5 + $0x8] sm:$0xff]  ;;  %v117_v56 = vlaneseq }
  0x5a   :  { %v103_v2 = vld [vmem:[#allocation5 + $0x10] sm:$0xff]  ;;  %v1116_v3 = vpack.c.bf16 %v102_v1, %v101_v0  ;;  %v104_v4 = vld [vmem:[#allocation5 + $0x18] sm:$0xff]  ;;  %v105_v6 = vld [vmem:[#allocation5 + $0x20] sm:$0xff] }
  0x5b   :  { %v1120_v5 = vpack.c.bf16 %v104_v4, %v103_v2  ;;  %v106_v7 = vld [vmem:[#allocation5 + $0x28] sm:$0xff]  ;;  %v93_v9 = vld [vmem:[#allocation2] sm:$0xff]  ;;  %v107_v10 = vld [vmem:[#allocation5 + $0x30] sm:$0xff]  ;;  %v1572_v57 = vshrl.u32 %v117_v56, 7 }
  0x5c   :  { %1117 = vmatprep.subr.bf16.mxu0 %v1116_v3  ;;  %v1124_v8 = vpack.c.bf16 %v106_v7, %v105_v6  ;;  %v108_v11 = vld [vmem:[#allocation5 + $0x38] sm:$0xff]  ;;  %972 = vmatprep.mubr.f32.mxu0 %v93_v9  ;;  %v109_v13 = vld [vmem:[#allocation5 + $0x40] sm:$0xff]  ;;  %v110_v14 = vld [vmem:[#allocation5 + $0x48] sm:$0xff] }
  0x5d   :  { %1119 = vmatpush3.bf16.msra.mxu0 %v1116_v3  ;;  %v1128_v12 = vpack.c.bf16 %v108_v11, %v107_v10  ;;  %v1132_v15 = vpack.c.bf16 %v110_v14, %v109_v13  ;;  %v111_v16 = vld [vmem:[#allocation5 + $0x50] sm:$0xff]  ;;  %v112_v17 = vld [vmem:[#allocation5 + $0x58] sm:$0xff]  ;;  %v113_v19 = vld [vmem:[#allocation5 + $0x60] sm:$0xff]  ;;  %v119_v58 = vsub.s32 0, %v1572_v57 }
  0x5e   :  { %1121 = vmatprep.subr.bf16.mxu0 %v1120_v5  ;;  %v1136_v18 = vpack.c.bf16 %v112_v17, %v111_v16  ;;  %v114_v20 = vld [vmem:[#allocation5 + $0x68] sm:$0xff]  ;;  %v115_v22 = vld [vmem:[#allocation5 + $0x70] sm:$0xff]  ;;  %v116_v23 = vld [vmem:[#allocation5 + $0x78] sm:$0xff] }
  0x5f   :  { %v1140_v21 = vpack.c.bf16 %v114_v20, %v113_v19  ;;  %v1144_v24 = vpack.c.bf16 %v116_v23, %v115_v22  ;;  %v94_v25 = vld [vmem:[#allocation2 + $0x8] sm:$0xff]  ;;  %v95_v26 = vld [vmem:[#allocation2 + $0x10] sm:$0xff]  ;;  %v96_v27 = vld [vmem:[#allocation2 + $0x18] sm:$0xff] }
  0x60   :  { %v97_v28 = vld [vmem:[#allocation2 + $0x20] sm:$0xff]  ;;  %v98_v29 = vld [vmem:[#allocation2 + $0x28] sm:$0xff]  ;;  %v99_v30 = vld [vmem:[#allocation2 + $0x30] sm:$0xff] }
  0x61   :  { %1123 = vmatpush3.bf16.msra.mxu0 %v1120_v5  ;;  %v100_v31 = vld [vmem:[#allocation2 + $0x38] sm:$0xff]  ;;  %v298_v32 = vld [vmem:[#allocation7] sm:$0xff]  ;;  %v299_v33 = vld [vmem:[#allocation7 + $0x8] sm:$0xff] }
  0x62   :  { %1125 = vmatprep.subr.bf16.mxu0 %v1124_v8  ;;  %v1148_v34 = vpack.c.bf16 %v299_v33, %v298_v32  ;;  %v300_v35 = vld [vmem:[#allocation7 + $0x10] sm:$0xff]  ;;  %v301_v36 = vld [vmem:[#allocation7 + $0x18] sm:$0xff]  ;;  %v302_v38 = vld [vmem:[#allocation7 + $0x20] sm:$0xff] }
  0x63   :  { %v1152_v37 = vpack.c.bf16 %v301_v36, %v300_v35  ;;  %v303_v39 = vld [vmem:[#allocation7 + $0x28] sm:$0xff]  ;;  %v304_v41 = vld [vmem:[#allocation7 + $0x30] sm:$0xff]  ;;  %v305_v42 = vld [vmem:[#allocation7 + $0x38] sm:$0xff] }
  0x64   :  { %1149 = vmatprep.subr.bf16.mxu1 %v1148_v34  ;;  %v1156_v40 = vpack.c.bf16 %v303_v39, %v302_v38  ;;  %v1160_v43 = vpack.c.bf16 %v305_v42, %v304_v41  ;;  %v306_v44 = vld [vmem:[#allocation7 + $0x40] sm:$0xff]  ;;  %v307_v45 = vld [vmem:[#allocation7 + $0x48] sm:$0xff]  ;;  %v308_v47 = vld [vmem:[#allocation7 + $0x50] sm:$0xff] }
  0x65   :  { %1127 = vmatpush3.bf16.msra.mxu0 %v1124_v8  ;;  %1151 = vmatpush3.bf16.msra.mxu1 %v1148_v34  ;;  %v1164_v46 = vpack.c.bf16 %v307_v45, %v306_v44  ;;  %v309_v48 = vld [vmem:[#allocation7 + $0x58] sm:$0xff]  ;;  %v310_v50 = vld [vmem:[#allocation7 + $0x60] sm:$0xff]  ;;  %v311_v51 = vld [vmem:[#allocation7 + $0x68] sm:$0xff] }
  0x66   :  { %1129 = vmatprep.subr.bf16.mxu0 %v1128_v12  ;;  %1153 = vmatprep.subr.bf16.mxu1 %v1152_v37  ;;  %v1168_v49 = vpack.c.bf16 %v309_v48, %v308_v47  ;;  %v1172_v52 = vpack.c.bf16 %v311_v51, %v310_v50  ;;  %v312_v53 = vld [vmem:[#allocation7 + $0x70] sm:$0xff]  ;;  %v313_v54 = vld [vmem:[#allocation7 + $0x78] sm:$0xff]  ;;  %v1578_v59 = vld [vmem:[%s1754_s5] sm:$0xf]  ;;  %s1447_s5 = smov [#allocation11]  }
  0x67   :  { %v1176_v55 = vpack.c.bf16 %v313_v54, %v312_v53  ;;  %v120_v60 = vrot.slane %v1578_v59, %v119_v58  ;;  %s830_s3 = sshll.u32 %s1447_s5, 4  ;;  %s831_s3 = int_to_ptr.vmem [resolvable:$true] %s830_s3 }
  0x68   :  { %s1410_s24 = scalar_lea.vmem %s831_s3, 1024  ;;  %p1415_p13 = scmp.lt.s32.totalorder %s831_s3, %s831_s3 }
  0x69   :  { %1131 = vmatpush3.bf16.msra.mxu0 %v1128_v12  ;;  %1155 = vmatpush3.bf16.msra.mxu1 %v1152_v37  ;;  %p1411_p12 = scmp.ne.s32.totalorder %s831_s3, %s1410_s24  ;;  %p1416_p0 = scmp.lt.s32.totalorder %s1410_s24, %s1410_s24 }
  0x6a   :  { %1133 = vmatprep.subr.bf16.mxu0 %v1132_v15  ;;  %1157 = vmatprep.subr.bf16.mxu1 %v1156_v40 }
  0x6b   :  { %p1417_p1 = por %p1416_p0, %p1415_p13 }
  0x6d   :  { %1135 = vmatpush3.bf16.msra.mxu0 %v1132_v15  ;;  %1159 = vmatpush3.bf16.msra.mxu1 %v1156_v40  ;;  %p1418_p2 = pnand %p1417_p1, %p1411_p12 }
  0x6e   :  { %1137 = vmatprep.subr.bf16.mxu0 %v1136_v18  ;;  %1161 = vmatprep.subr.bf16.mxu1 %v1160_v43 }
  0x71   :  { %1139 = vmatpush3.bf16.msra.mxu0 %v1136_v18  ;;  %1163 = vmatpush3.bf16.msra.mxu1 %v1160_v43 }
  0x72   :  { %1141 = vmatprep.subr.bf16.mxu0 %v1140_v21  ;;  %1165 = vmatprep.subr.bf16.mxu1 %v1164_v46 }
  0x75   :  { %1143 = vmatpush3.bf16.msra.mxu0 %v1140_v21  ;;  %1167 = vmatpush3.bf16.msra.mxu1 %v1164_v46 }
  0x76   :  { %1145 = vmatprep.subr.bf16.mxu0 %v1144_v24  ;;  %1169 = vmatprep.subr.bf16.mxu1 %v1168_v49 }
  0x79   :  { %1147 = vmatpush3.bf16.msra.mxu0 %v1144_v24  ;;  %1171 = vmatpush3.bf16.msra.mxu1 %v1168_v49 }
  0x7a   :  { %1173 = vmatprep.subr.bf16.mxu1 %v1172_v52 }
  0x7c   :  { %973 = vmatmul.mubr.f32.vlgmr.msra.gmra.mrb[0].mxu0 %v94_v25 }
  0x7d   :  { %975 = vmatprep.mubr.f32.mxu0 %v95_v26  ;;  %1175 = vmatpush3.bf16.msra.mxu1 %v1172_v52 }
  0x7e   :  { %1177 = vmatprep.subr.bf16.mxu1 %v1176_v55 }
  0x80   :  { %976 = vmatmul.mubr.f32.gmra.mrb[2].mxu0 %v96_v27 }
  0x81   :  { %978 = vmatprep.mubr.f32.mxu0 %v97_v28  ;;  %1179 = vmatpush3.bf16.msra.mxu1 %v1176_v55 }
  0x84   :  { %979 = vmatmul.mubr.f32.gmra.mrb[4].mxu0 %v98_v29 }
  0x85   :  { %981 = vmatprep.mubr.f32.mxu0 %v99_v30 }
  0x88   :  { %982 = vmatmul.mubr.f32.gmra.mrb[6].mxu0 %v100_v31 }
 0x14f   :  { %v974_v61 = vpop.f32.mrb[0].mxu0 }
 0x150   :  { %v1581_v62 = vadd.f32 %v974_v61, %v120_v60  ;;  %v187_v63 = vpop.f32.mrb[1].mxu0 }
 0x151   :  { %v1583_v0 = vadd.f32 %v187_v63, %v120_v60 }
 0x152   :  { %v227_v1 = vmul.f32 %v1581_v62, %v1581_v62 }
 0x153   :  { %v226_v2 = vmul.f32 %v1583_v0, %v1583_v0  ;;  %v977_v3 = vpop.f32.mrb[2].mxu0 }
 0x154   :  { %v235_v4 = vmul.f32 %v227_v1, %v1581_v62  ;;  %v1590_v5 = vadd.f32 %v977_v3, %v120_v60  ;;  %v197_v6 = vpop.f32.mrb[3].mxu0 }
 0x155   :  { %v234_v7 = vmul.f32 %v226_v2, %v1583_v0  ;;  %v1593_v8 = vadd.f32 %v197_v6, %v120_v60 }
 0x156   :  { %v243_v9 = vmul.f32 0.044715, %v235_v4  ;;  %v229_v10 = vmul.f32 %v1590_v5, %v1590_v5 }
 0x157   :  { %v228_v11 = vmul.f32 %v1593_v8, %v1593_v8  ;;  %v980_v12 = vpop.f32.mrb[4].mxu0  ;;  %v242_v13 = vmul.f32 0.044715, %v234_v7 }
 0x158   :  { %v251_v14 = vadd.f32 %v243_v9, %v1581_v62  ;;  %v237_v15 = vmul.f32 %v229_v10, %v1590_v5  ;;  %v1601_v16 = vadd.f32 %v980_v12, %v120_v60  ;;  %v207_v17 = vpop.f32.mrb[5].mxu0 }
 0x159   :  { %v236_v18 = vmul.f32 %v228_v11, %v1593_v8  ;;  %v1604_v19 = vadd.f32 %v207_v17, %v120_v60  ;;  %v250_v20 = vadd.f32 %v242_v13, %v1583_v0 }
 0x15a   :  { %v259_v21 = vmul.f32 0.7978846, %v251_v14  ;;  %v245_v22 = vmul.f32 0.044715, %v237_v15  ;;  %v231_v23 = vmul.f32 %v1601_v16, %v1601_v16 }
 0x15b   :  { %v244_v24 = vmul.f32 0.044715, %v236_v18  ;;  %v230_v25 = vmul.f32 %v1604_v19, %v1604_v19  ;;  %v983_v26 = vpop.f32.mrb[6].mxu0  ;;  %v258_v27 = vmul.f32 0.7978846, %v250_v20 }
 0x15c   :  { %v253_v28 = vadd.f32 %v245_v22, %v1590_v5  ;;  %v239_v29 = vmul.f32 %v231_v23, %v1601_v16  ;;  %v1613_v30 = vadd.f32 %v983_v26, %v120_v60  ;;  %v217_v31 = vpop.f32.mrb[7].mxu0  ;;  %1252 = vtanh.f32 %v259_v21  ;;  %v496_v26 = vld [vmem:[#allocation8 + $0x8] sm:$0xff] }
 0x15d   :  { %v252_v32 = vadd.f32 %v244_v24, %v1593_v8  ;;  %v238_v33 = vmul.f32 %v230_v25, %v1604_v19  ;;  %v218_v34 = vadd.f32 %v217_v31, %v120_v60  ;;  %1254 = vtanh.f32 %v258_v27  ;;  %v500_v31 = vld [vmem:[#allocation8 + $0x28] sm:$0xff] }
 0x15e   :  { %v261_v35 = vmul.f32 0.7978846, %v253_v28  ;;  %v247_v36 = vmul.f32 0.044715, %v239_v29  ;;  %v233_v37 = vmul.f32 %v1613_v30, %v1613_v30  ;;  %v497_v28 = vld [vmem:[#allocation8 + $0x10] sm:$0xff]  ;;  %v498_v29 = vld [vmem:[#allocation8 + $0x18] sm:$0xff] }
 0x15f   :  { %v260_v38 = vmul.f32 0.7978846, %v252_v32  ;;  %v246_v39 = vmul.f32 0.044715, %v238_v33  ;;  %v232_v40 = vmul.f32 %v218_v34, %v218_v34  ;;  %v501_v33 = vld [vmem:[#allocation8 + $0x30] sm:$0xff] }
 0x160   :  { %v255_v41 = vadd.f32 %v247_v36, %v1601_v16  ;;  %v241_v42 = vmul.f32 %v233_v37, %v1613_v30  ;;  %1256 = vtanh.f32 %v261_v35  ;;  %v503_v35 = vld [vmem:[#allocation8 + $0x40] sm:$0xff]  ;;  %v504_v36 = vld [vmem:[#allocation8 + $0x48] sm:$0xff] }
 0x161   :  { %v254_v43 = vadd.f32 %v246_v39, %v1604_v19  ;;  %v240_v44 = vmul.f32 %v232_v40, %v218_v34  ;;  %1258 = vtanh.f32 %v260_v38  ;;  %v1196_v37 = vpack.c.bf16 %v504_v36, %v503_v35  ;;  %v505_v38 = vld [vmem:[#allocation8 + $0x50] sm:$0xff]  ;;  %v506_v39 = vld [vmem:[#allocation8 + $0x58] sm:$0xff] }
 0x162   :  { %v263_v45 = vmul.f32 0.7978846, %v255_v41  ;;  %v249_v46 = vmul.f32 0.044715, %v241_v42  ;;  %v1200_v40 = vpack.c.bf16 %v506_v39, %v505_v38  ;;  %v507_v41 = vld [vmem:[#allocation8 + $0x60] sm:$0xff]  ;;  %v508_v42 = vld [vmem:[#allocation8 + $0x68] sm:$0xff] }
 0x163   :  { %v262_v47 = vmul.f32 0.7978846, %v254_v43  ;;  %v248_v48 = vmul.f32 0.044715, %v240_v44  ;;  %v1204_v43 = vpack.c.bf16 %v508_v42, %v507_v41  ;;  %v509_v44 = vld [vmem:[#allocation8 + $0x70] sm:$0xff] }
 0x164   :  { %v257_v49 = vadd.f32 %v249_v46, %v1613_v30  ;;  %1260 = vtanh.f32 %v263_v45  ;;  %v510_v45 = vld [vmem:[#allocation8 + $0x78] sm:$0xff] }
 0x165   :  { %v256_v50 = vadd.f32 %v248_v48, %v218_v34  ;;  %1262 = vtanh.f32 %v262_v47  ;;  %v1208_v46 = vpack.c.bf16 %v510_v45, %v509_v44  ;;  %v316_v47 = vsub.s32 1, %v1572_v57 }
 0x166   :  { %v1253_v51 = vpop.eup %1252  ;;  %v265_v52 = vmul.f32 0.7978846, %v257_v49 }
 0x167   :  { %v1255_v53 = vpop.eup %1254  ;;  %v264_v54 = vmul.f32 0.7978846, %v256_v50  ;;  %v275_v55 = vadd.f32 1.0, %v1253_v51  ;;  %v317_v48 = vrot.slane %v1578_v59, %v316_v47 }
 0x168   :  { %v274_v56 = vadd.f32 1.0, %v1255_v53  ;;  %1264 = vtanh.f32 %v265_v52 }
 0x169   :  { %v283_v58 = vmul.f32 0.5, %v275_v55  ;;  %1266 = vtanh.f32 %v264_v54 }
 0x16a   :  { %v1257_v60 = vpop.eup %1256  ;;  %v282_v61 = vmul.f32 0.5, %v274_v56 }
 0x16b   :  { %v1259_v63 = vpop.eup %1258  ;;  %v277_v1 = vadd.f32 1.0, %v1257_v60  ;;  %v291_v4 = vmul.f32 %v283_v58, %v1581_v62 }
 0x16c   :  { %v290_v2 = vmul.f32 %v282_v61, %v1583_v0  ;;  %v276_v3 = vadd.f32 1.0, %v1259_v63 }
 0x16d   :  { %v285_v6 = vmul.f32 0.5, %v277_v1 }
 0x16e   :  { %v1261_v7 = vpop.eup %1260  ;;  %1016 = vmatprep.mubr.f32.mxu1 %v290_v2  ;;  %v284_v9 = vmul.f32 0.5, %v276_v3 }
 0x16f   :  { %v1263_v10 = vpop.eup %1262  ;;  %1017 = vmatmul.mubr.f32.vlgmr.msra.gmra.mrb[0].mxu1 %v291_v4  ;;  %v279_v11 = vadd.f32 1.0, %v1261_v7  ;;  %v293_v14 = vmul.f32 %v285_v6, %v1590_v5  ;;  %v495_v5 = vld [vmem:[#allocation8] sm:$0xff] }
 0x170   :  { %v292_v12 = vmul.f32 %v284_v9, %v1593_v8  ;;  %v278_v13 = vadd.f32 1.0, %v1263_v10  ;;  %v1180_v27 = vpack.c.bf16 %v496_v26, %v495_v5 }
 0x171   :  { %v287_v15 = vmul.f32 0.5, %v279_v11 }
 0x172   :  { %v1265_v17 = vpop.eup %1264  ;;  %1019 = vmatprep.mubr.f32.mxu1 %v292_v12  ;;  %v286_v18 = vmul.f32 0.5, %v278_v13  ;;  %1181 = vmatprep.subr.bf16.mxu0 %v1180_v27 }
 0x173   :  { %v1267_v0 = vpop.eup %1266  ;;  %1020 = vmatmul.mubr.f32.gmra.mrb[2].mxu1 %v293_v14  ;;  %v281_v20 = vadd.f32 1.0, %v1265_v17  ;;  %v295_v22 = vmul.f32 %v287_v15, %v1601_v16  ;;  %1183 = vmatpush3.bf16.msra.mxu0 %v1180_v27  ;;  %v499_v16 = vld [vmem:[#allocation8 + $0x20] sm:$0xff] }
 0x174   :  { %v294_v62 = vmul.f32 %v286_v18, %v1604_v19  ;;  %v280_v21 = vadd.f32 1.0, %v1267_v0  ;;  %v1184_v19 = vpack.c.bf16 %v498_v29, %v497_v28  ;;  %v1188_v32 = vpack.c.bf16 %v500_v31, %v499_v16 }
 0x175   :  { %v289_v23 = vmul.f32 0.5, %v281_v20 }
 0x176   :  { %1022 = vmatprep.mubr.f32.mxu1 %v294_v62  ;;  %v288_v24 = vmul.f32 0.5, %v280_v21  ;;  %1185 = vmatprep.subr.bf16.mxu0 %v1184_v19 }
 0x177   :  { %1023 = vmatmul.mubr.f32.gmra.mrb[4].mxu1 %v295_v22  ;;  %v297_v25 = vmul.f32 %v289_v23, %v1613_v30  ;;  %1187 = vmatpush3.bf16.msra.mxu0 %v1184_v19 }
 0x178   :  { %v296_v8 = vmul.f32 %v288_v24, %v218_v34  ;;  %1189 = vmatprep.subr.bf16.mxu0 %v1188_v32  ;;  %v502_v34 = vld [vmem:[#allocation8 + $0x38] sm:$0xff] }
 0x179   :  { %v1192_v30 = vpack.c.bf16 %v502_v34, %v501_v33 }
 0x17a   :  { %1025 = vmatprep.mubr.f32.mxu1 %v296_v8 }
 0x17b   :  { %1026 = vmatmul.mubr.f32.gmra.mrb[6].mxu1 %v297_v25  ;;  %1191 = vmatpush3.bf16.msra.mxu0 %v1188_v32 }
 0x17c   :  { %1193 = vmatprep.subr.bf16.mxu0 %v1192_v30 }
 0x17f   :  { %1195 = vmatpush3.bf16.msra.mxu0 %v1192_v30 }
 0x180   :  { %1197 = vmatprep.subr.bf16.mxu0 %v1196_v37 }
 0x183   :  { %1199 = vmatpush3.bf16.msra.mxu0 %v1196_v37 }
 0x184   :  { %1201 = vmatprep.subr.bf16.mxu0 %v1200_v40 }
 0x187   :  { %1203 = vmatpush3.bf16.msra.mxu0 %v1200_v40 }
 0x188   :  { %1205 = vmatprep.subr.bf16.mxu0 %v1204_v43 }
 0x18b   :  { %1207 = vmatpush3.bf16.msra.mxu0 %v1204_v43 }
 0x18c   :  { %1209 = vmatprep.subr.bf16.mxu0 %v1208_v46 }
 0x18f   :  { %1211 = vmatpush3.bf16.msra.mxu0 %v1208_v46 }
 0x242   :  { %v1018_v49 = vpop.f32.mrb[0].mxu1 }
 0x243   :  { %v1632_v50 = vadd.f32 %v1018_v49, %v317_v48  ;;  %v384_v51 = vpop.f32.mrb[1].mxu1 }
 0x244   :  { %v1634_v52 = vadd.f32 %v384_v51, %v317_v48 }
 0x245   :  { %v424_v53 = vmul.f32 %v1632_v50, %v1632_v50 }
 0x246   :  { %v423_v54 = vmul.f32 %v1634_v52, %v1634_v52  ;;  %v1021_v55 = vpop.f32.mrb[2].mxu1 }
 0x247   :  { %v432_v56 = vmul.f32 %v424_v53, %v1632_v50  ;;  %v1641_v58 = vadd.f32 %v1021_v55, %v317_v48  ;;  %v394_v60 = vpop.f32.mrb[3].mxu1 }
 0x248   :  { %v431_v61 = vmul.f32 %v423_v54, %v1634_v52  ;;  %v1644_v63 = vadd.f32 %v394_v60, %v317_v48 }
 0x249   :  { %v440_v1 = vmul.f32 0.044715, %v432_v56  ;;  %v426_v2 = vmul.f32 %v1641_v58, %v1641_v58 }
 0x24a   :  { %v439_v3 = vmul.f32 0.044715, %v431_v61  ;;  %v425_v4 = vmul.f32 %v1644_v63, %v1644_v63  ;;  %v1024_v6 = vpop.f32.mrb[4].mxu1 }
 0x24b   :  { %v448_v7 = vadd.f32 %v440_v1, %v1632_v50  ;;  %v434_v9 = vmul.f32 %v426_v2, %v1641_v58  ;;  %v1652_v10 = vadd.f32 %v1024_v6, %v317_v48  ;;  %v404_v11 = vpop.f32.mrb[5].mxu1 }
 0x24c   :  { %v447_v12 = vadd.f32 %v439_v3, %v1634_v52  ;;  %v433_v13 = vmul.f32 %v425_v4, %v1644_v63  ;;  %v1656_v14 = vadd.f32 %v404_v11, %v317_v48 }
 0x24d   :  { %v456_v15 = vmul.f32 0.7978846, %v448_v7  ;;  %v442_v17 = vmul.f32 0.044715, %v434_v9  ;;  %v428_v18 = vmul.f32 %v1652_v10, %v1652_v10 }
 0x24e   :  { %v455_v0 = vmul.f32 0.7978846, %v447_v12  ;;  %v441_v20 = vmul.f32 0.044715, %v433_v13  ;;  %v427_v62 = vmul.f32 %v1656_v14, %v1656_v14  ;;  %v1027_v21 = vpop.f32.mrb[6].mxu1 }
 0x24f   :  { %1268 = vtanh.f32 %v456_v15  ;;  %v450_v22 = vadd.f32 %v442_v17, %v1641_v58  ;;  %v436_v23 = vmul.f32 %v428_v18, %v1652_v10  ;;  %v1664_v24 = vadd.f32 %v1027_v21, %v317_v48  ;;  %v414_v8 = vpop.f32.mrb[7].mxu1 }
 0x250   :  { %v449_v25 = vadd.f32 %v441_v20, %v1644_v63  ;;  %v435_v5 = vmul.f32 %v427_v62, %v1656_v14  ;;  %v415_v26 = vadd.f32 %v414_v8, %v317_v48  ;;  %1270 = vtanh.f32 %v455_v0  ;;  %v693_v62 = vld [vmem:[#allocation10 + $0x8] sm:$0xff] }
 0x251   :  { %v458_v27 = vmul.f32 0.7978846, %v450_v22  ;;  %v444_v28 = vmul.f32 0.044715, %v436_v23  ;;  %v430_v29 = vmul.f32 %v1664_v24, %v1664_v24  ;;  %v694_v22 = vld [vmem:[#allocation10 + $0x10] sm:$0xff]  ;;  %v695_v23 = vld [vmem:[#allocation10 + $0x18] sm:$0xff] }
 0x252   :  { %v457_v19 = vmul.f32 0.7978846, %v449_v25  ;;  %v443_v16 = vmul.f32 0.044715, %v435_v5  ;;  %v429_v31 = vmul.f32 %v415_v26, %v415_v26  ;;  %v697_v8 = vld [vmem:[#allocation10 + $0x28] sm:$0xff]  ;;  %v698_v5 = vld [vmem:[#allocation10 + $0x30] sm:$0xff] }
 0x253   :  { %v452_v32 = vadd.f32 %v444_v28, %v1652_v10  ;;  %v438_v33 = vmul.f32 %v430_v29, %v1664_v24  ;;  %1272 = vtanh.f32 %v458_v27  ;;  %v700_v27 = vld [vmem:[#allocation10 + $0x40] sm:$0xff]  ;;  %v701_v28 = vld [vmem:[#allocation10 + $0x48] sm:$0xff] }
 0x254   :  { %v451_v34 = vadd.f32 %v443_v16, %v1656_v14  ;;  %v437_v30 = vmul.f32 %v429_v31, %v415_v26  ;;  %1274 = vtanh.f32 %v457_v19  ;;  %v1228_v29 = vpack.c.bf16 %v701_v28, %v700_v27  ;;  %v702_v19 = vld [vmem:[#allocation10 + $0x50] sm:$0xff]  ;;  %v703_v16 = vld [vmem:[#allocation10 + $0x58] sm:$0xff] }
 0x255   :  { %v460_v35 = vmul.f32 0.7978846, %v452_v32  ;;  %v446_v36 = vmul.f32 0.044715, %v438_v33  ;;  %v1232_v31 = vpack.c.bf16 %v703_v16, %v702_v19  ;;  %v704_v32 = vld [vmem:[#allocation10 + $0x60] sm:$0xff]  ;;  %v705_v33 = vld [vmem:[#allocation10 + $0x68] sm:$0xff] }
 0x256   :  { %v459_v37 = vmul.f32 0.7978846, %v451_v34  ;;  %v445_v38 = vmul.f32 0.044715, %v437_v30  ;;  %v1236_v34 = vpack.c.bf16 %v705_v33, %v704_v32  ;;  %v706_v30 = vld [vmem:[#allocation10 + $0x70] sm:$0xff] }
 0x257   :  { %v454_v39 = vadd.f32 %v446_v36, %v1664_v24  ;;  %1276 = vtanh.f32 %v460_v35  ;;  %v707_v35 = vld [vmem:[#allocation10 + $0x78] sm:$0xff] }
 0x258   :  { %v453_v40 = vadd.f32 %v445_v38, %v415_v26  ;;  %1278 = vtanh.f32 %v459_v37  ;;  %v1240_v36 = vpack.c.bf16 %v707_v35, %v706_v30  ;;  %v513_v37 = vsub.s32 2, %v1572_v57 }
 0x259   :  { %v1269_v41 = vpop.eup %1268  ;;  %v462_v42 = vmul.f32 0.7978846, %v454_v39 }
 0x25a   :  { %v1271_v43 = vpop.eup %1270  ;;  %v472_v44 = vadd.f32 1.0, %v1269_v41  ;;  %v461_v45 = vmul.f32 0.7978846, %v453_v40  ;;  %v514_v38 = vrot.slane %v1578_v59, %v513_v37 }
 0x25b   :  { %v471_v46 = vadd.f32 1.0, %v1271_v43  ;;  %1280 = vtanh.f32 %v462_v42 }
 0x25c   :  { %v480_v47 = vmul.f32 0.5, %v472_v44  ;;  %1282 = vtanh.f32 %v461_v45 }
 0x25d   :  { %v1273_v48 = vpop.eup %1272  ;;  %v479_v49 = vmul.f32 0.5, %v471_v46 }
 0x25e   :  { %v1275_v51 = vpop.eup %1274  ;;  %v474_v53 = vadd.f32 1.0, %v1273_v48  ;;  %v488_v56 = vmul.f32 %v480_v47, %v1632_v50 }
 0x25f   :  { %v487_v54 = vmul.f32 %v479_v49, %v1634_v52  ;;  %v473_v55 = vadd.f32 1.0, %v1275_v51 }
 0x260   :  { %v482_v60 = vmul.f32 0.5, %v474_v53 }
 0x261   :  { %v1277_v61 = vpop.eup %1276  ;;  %1060 = vmatprep.mubr.f32.mxu0 %v487_v54  ;;  %v481_v1 = vmul.f32 0.5, %v473_v55 }
 0x262   :  { %v1279_v2 = vpop.eup %1278  ;;  %1061 = vmatmul.mubr.f32.vlgmr.msra.gmra.mrb[8].mxu0 %v488_v56  ;;  %v476_v3 = vadd.f32 1.0, %v1277_v61  ;;  %v490_v7 = vmul.f32 %v482_v60, %v1641_v58  ;;  %v692_v58 = vld [vmem:[#allocation10] sm:$0xff] }
 0x263   :  { %v489_v4 = vmul.f32 %v481_v1, %v1644_v63  ;;  %v475_v6 = vadd.f32 1.0, %v1279_v2  ;;  %v1212_v21 = vpack.c.bf16 %v693_v62, %v692_v58 }
 0x264   :  { %v484_v9 = vmul.f32 0.5, %v476_v3 }
 0x265   :  { %v1281_v11 = vpop.eup %1280  ;;  %1063 = vmatprep.mubr.f32.mxu0 %v489_v4  ;;  %v483_v12 = vmul.f32 0.5, %v475_v6  ;;  %1213 = vmatprep.subr.bf16.mxu1 %v1212_v21 }
 0x266   :  { %v1283_v52 = vpop.eup %1282  ;;  %1064 = vmatmul.mubr.f32.gmra.mrb[10].mxu0 %v490_v7  ;;  %v478_v13 = vadd.f32 1.0, %v1281_v11  ;;  %v492_v17 = vmul.f32 %v484_v9, %v1652_v10  ;;  %1215 = vmatpush3.bf16.msra.mxu1 %v1212_v21  ;;  %v696_v10 = vld [vmem:[#allocation10 + $0x20] sm:$0xff] }
 0x267   :  { %v491_v50 = vmul.f32 %v483_v12, %v1656_v14  ;;  %v477_v15 = vadd.f32 1.0, %v1283_v52  ;;  %v1216_v14 = vpack.c.bf16 %v695_v23, %v694_v22  ;;  %v1220_v25 = vpack.c.bf16 %v697_v8, %v696_v10 }
 0x268   :  { %v486_v18 = vmul.f32 0.5, %v478_v13 }
 0x269   :  { %1066 = vmatprep.mubr.f32.mxu0 %v491_v50  ;;  %v485_v0 = vmul.f32 0.5, %v477_v15  ;;  %1217 = vmatprep.subr.bf16.mxu1 %v1216_v14 }
 0x26a   :  { %1067 = vmatmul.mubr.f32.gmra.mrb[12].mxu0 %v492_v17  ;;  %v494_v20 = vmul.f32 %v486_v18, %v1664_v24  ;;  %1219 = vmatpush3.bf16.msra.mxu1 %v1216_v14 }
 0x26b   :  { %v493_v63 = vmul.f32 %v485_v0, %v415_v26  ;;  %1221 = vmatprep.subr.bf16.mxu1 %v1220_v25  ;;  %v699_v26 = vld [vmem:[#allocation10 + $0x38] sm:$0xff] }
 0x26c   :  { %v1224_v24 = vpack.c.bf16 %v699_v26, %v698_v5 }
 0x26d   :  { %1069 = vmatprep.mubr.f32.mxu0 %v493_v63 }
 0x26e   :  { %1070 = vmatmul.mubr.f32.gmra.mrb[14].mxu0 %v494_v20  ;;  %1223 = vmatpush3.bf16.msra.mxu1 %v1220_v25 }
 0x26f   :  { %1225 = vmatprep.subr.bf16.mxu1 %v1224_v24 }
 0x272   :  { %1227 = vmatpush3.bf16.msra.mxu1 %v1224_v24 }
 0x273   :  { %1229 = vmatprep.subr.bf16.mxu1 %v1228_v29 }
 0x276   :  { %1231 = vmatpush3.bf16.msra.mxu1 %v1228_v29 }
 0x277   :  { %1233 = vmatprep.subr.bf16.mxu1 %v1232_v31 }
 0x27a   :  { %1235 = vmatpush3.bf16.msra.mxu1 %v1232_v31 }
 0x27b   :  { %1237 = vmatprep.subr.bf16.mxu1 %v1236_v34 }
 0x27e   :  { %1239 = vmatpush3.bf16.msra.mxu1 %v1236_v34 }
 0x27f   :  { %1241 = vmatprep.subr.bf16.mxu1 %v1240_v36 }
 0x282   :  { %1243 = vmatpush3.bf16.msra.mxu1 %v1240_v36 }
 0x335   :  { %v1062_v39 = vpop.f32.mrb[8].mxu0 }
 0x336   :  { %v1683_v40 = vadd.f32 %v1062_v39, %v514_v38  ;;  %v581_v41 = vpop.f32.mrb[9].mxu0 }
 0x337   :  { %v1685_v42 = vadd.f32 %v581_v41, %v514_v38 }
 0x338   :  { %v621_v43 = vmul.f32 %v1683_v40, %v1683_v40 }
 0x339   :  { %v620_v44 = vmul.f32 %v1685_v42, %v1685_v42  ;;  %v1065_v45 = vpop.f32.mrb[10].mxu0 }
 0x33a   :  { %v629_v46 = vmul.f32 %v621_v43, %v1683_v40  ;;  %v1692_v47 = vadd.f32 %v1065_v45, %v514_v38  ;;  %v591_v48 = vpop.f32.mrb[11].mxu0 }
 0x33b   :  { %v628_v49 = vmul.f32 %v620_v44, %v1685_v42  ;;  %v1695_v51 = vadd.f32 %v591_v48, %v514_v38 }
 0x33c   :  { %v637_v53 = vmul.f32 0.044715, %v629_v46  ;;  %v623_v54 = vmul.f32 %v1692_v47, %v1692_v47 }
 0x33d   :  { %v636_v55 = vmul.f32 0.044715, %v628_v49  ;;  %v622_v56 = vmul.f32 %v1695_v51, %v1695_v51  ;;  %v1068_v60 = vpop.f32.mrb[12].mxu0 }
 0x33e   :  { %v645_v61 = vadd.f32 %v637_v53, %v1683_v40  ;;  %v631_v1 = vmul.f32 %v623_v54, %v1692_v47  ;;  %v1703_v2 = vadd.f32 %v1068_v60, %v514_v38  ;;  %v601_v3 = vpop.f32.mrb[13].mxu0 }
 0x33f   :  { %v644_v4 = vadd.f32 %v636_v55, %v1685_v42  ;;  %v630_v6 = vmul.f32 %v622_v56, %v1695_v51  ;;  %v1707_v7 = vadd.f32 %v601_v3, %v514_v38 }
 0x340   :  { %v653_v9 = vmul.f32 0.7978846, %v645_v61  ;;  %v639_v11 = vmul.f32 0.044715, %v631_v1  ;;  %v625_v12 = vmul.f32 %v1703_v2, %v1703_v2 }
 0x341   :  { %v652_v52 = vmul.f32 0.7978846, %v644_v4  ;;  %v638_v13 = vmul.f32 0.044715, %v630_v6  ;;  %v624_v50 = vmul.f32 %v1707_v7, %v1707_v7  ;;  %v1071_v15 = vpop.f32.mrb[14].mxu0 }
 0x342   :  { %1284 = vtanh.f32 %v653_v9  ;;  %v647_v17 = vadd.f32 %v639_v11, %v1692_v47  ;;  %v633_v18 = vmul.f32 %v625_v12, %v1703_v2  ;;  %v1715_v0 = vadd.f32 %v1071_v15, %v514_v38  ;;  %v611_v63 = vpop.f32.mrb[15].mxu0 }
 0x343   :  { %v646_v20 = vadd.f32 %v638_v13, %v1695_v51  ;;  %v632_v58 = vmul.f32 %v624_v50, %v1707_v7  ;;  %v612_v62 = vadd.f32 %v611_v63, %v514_v38  ;;  %1286 = vtanh.f32 %v652_v52 }
 0x344   :  { %v655_v21 = vmul.f32 0.7978846, %v647_v17  ;;  %v641_v22 = vmul.f32 0.044715, %v633_v18  ;;  %v627_v23 = vmul.f32 %v1715_v0, %v1715_v0 }
 0x345   :  { %v654_v14 = vmul.f32 0.7978846, %v646_v20  ;;  %v640_v10 = vmul.f32 0.044715, %v632_v58  ;;  %v626_v8 = vmul.f32 %v612_v62, %v612_v62 }
 0x346   :  { %v649_v25 = vadd.f32 %v641_v22, %v1703_v2  ;;  %v635_v5 = vmul.f32 %v627_v23, %v1715_v0  ;;  %1288 = vtanh.f32 %v655_v21 }
 0x347   :  { %v648_v26 = vadd.f32 %v640_v10, %v1707_v7  ;;  %v634_v24 = vmul.f32 %v626_v8, %v612_v62  ;;  %1290 = vtanh.f32 %v654_v14 }
 0x348   :  { %v657_v27 = vmul.f32 0.7978846, %v649_v25  ;;  %v643_v28 = vmul.f32 0.044715, %v635_v5 }
 0x349   :  { %v656_v29 = vmul.f32 0.7978846, %v648_v26  ;;  %v642_v19 = vmul.f32 0.044715, %v634_v24 }
 0x34a   :  { %v651_v16 = vadd.f32 %v643_v28, %v1715_v0  ;;  %1292 = vtanh.f32 %v657_v27 }
 0x34b   :  { %v650_v31 = vadd.f32 %v642_v19, %v612_v62  ;;  %1294 = vtanh.f32 %v656_v29 }
 0x34c   :  { %v1285_v32 = vpop.eup %1284  ;;  %v659_v33 = vmul.f32 0.7978846, %v651_v16 }
 0x34d   :  { %v1287_v34 = vpop.eup %1286  ;;  %v669_v30 = vadd.f32 1.0, %v1285_v32  ;;  %v658_v35 = vmul.f32 0.7978846, %v650_v31 }
 0x34e   :  { %v668_v36 = vadd.f32 1.0, %v1287_v34  ;;  %1296 = vtanh.f32 %v659_v33 }
 0x34f   :  { %v677_v37 = vmul.f32 0.5, %v669_v30  ;;  %1298 = vtanh.f32 %v658_v35 }
 0x350   :  { %v1289_v38 = vpop.eup %1288  ;;  %v676_v39 = vmul.f32 0.5, %v668_v36 }
 0x351   :  { %v1291_v41 = vpop.eup %1290  ;;  %v671_v43 = vadd.f32 1.0, %v1289_v38  ;;  %v685_v46 = vmul.f32 %v677_v37, %v1683_v40 }
 0x352   :  { %v684_v44 = vmul.f32 %v676_v39, %v1685_v42  ;;  %v670_v45 = vadd.f32 1.0, %v1291_v41 }
 0x353   :  { %v679_v48 = vmul.f32 0.5, %v671_v43 }
 0x354   :  { %v1293_v49 = vpop.eup %1292  ;;  %1104 = vmatprep.mubr.f32.mxu1 %v684_v44  ;;  %v678_v53 = vmul.f32 0.5, %v670_v45 }
 0x355   :  { %v1295_v54 = vpop.eup %1294  ;;  %1105 = vmatmul.mubr.f32.vlgmr.msra.gmra.mrb[8].mxu1 %v685_v46  ;;  %v673_v55 = vadd.f32 1.0, %v1293_v49  ;;  %v687_v61 = vmul.f32 %v679_v48, %v1692_v47  ;;  %v710_v47 = vsub.s32 3, %v1572_v57 }
 0x356   :  { %v686_v56 = vmul.f32 %v678_v53, %v1695_v51  ;;  %v672_v60 = vadd.f32 1.0, %v1295_v54 }
 0x357   :  { %v681_v1 = vmul.f32 0.5, %v673_v55  ;;  %v711_v50 = vrot.slane %v1578_v59, %v710_v47 }
 0x358   :  { %v1297_v3 = vpop.eup %1296  ;;  %1107 = vmatprep.mubr.f32.mxu1 %v686_v56  ;;  %v680_v4 = vmul.f32 0.5, %v672_v60 }
 0x359   :  { %v1299_v42 = vpop.eup %1298  ;;  %1108 = vmatmul.mubr.f32.gmra.mrb[10].mxu1 %v687_v61  ;;  %v675_v6 = vadd.f32 1.0, %v1297_v3  ;;  %v689_v11 = vmul.f32 %v681_v1, %v1703_v2 }
 0x35a   :  { %v688_v40 = vmul.f32 %v680_v4, %v1707_v7  ;;  %v674_v9 = vadd.f32 1.0, %v1299_v42 }
 0x35b   :  { %v683_v12 = vmul.f32 0.5, %v675_v6 }
 0x35c   :  { %1110 = vmatprep.mubr.f32.mxu1 %v688_v40  ;;  %v682_v52 = vmul.f32 0.5, %v674_v9 }
 0x35d   :  { %1111 = vmatmul.mubr.f32.gmra.mrb[12].mxu1 %v689_v11  ;;  %v691_v13 = vmul.f32 %v683_v12, %v1715_v0 }
 0x35e   :  { %v690_v51 = vmul.f32 %v682_v52, %v612_v62 }
 0x360   :  { %1113 = vmatprep.mubr.f32.mxu1 %v690_v51 }
 0x361   :  { %1114 = vmatmul.mubr.f32.gmra.mrb[14].mxu1 %v691_v13 }
 0x428   :  { %v1106_v15 = vpop.f32.mrb[8].mxu1 }
 0x429   :  { %v784_v17 = vadd.f32 %v1106_v15, %v711_v50  ;;  %v778_v18 = vpop.f32.mrb[9].mxu1 }
 0x42a   :  { %v779_v7 = vadd.f32 %v778_v18, %v711_v50 }
 0x42b   :  { %818 = vst [vmem:[#allocation11 + $0x8] sm:$0xff] %v784_v17 }
 0x42c   :  { %817 = vst [vmem:[#allocation11] sm:$0xff] %v779_v7  ;;  %v1109_v2 = vpop.f32.mrb[10].mxu1 }
 0x42d   :  { %v794_v63 = vadd.f32 %v1109_v2, %v711_v50  ;;  %v788_v20 = vpop.f32.mrb[11].mxu1 }
 0x42e   :  { %v789_v58 = vadd.f32 %v788_v20, %v711_v50 }
 0x42f   :  { %820 = vst [vmem:[#allocation11 + $0x18] sm:$0xff] %v794_v63 }
 0x430   :  { %819 = vst [vmem:[#allocation11 + $0x10] sm:$0xff] %v789_v58  ;;  %v1112_v62 = vpop.f32.mrb[12].mxu1 }
 0x431   :  { %v804_v0 = vadd.f32 %v1112_v62, %v711_v50  ;;  %v798_v21 = vpop.f32.mrb[13].mxu1 }
 0x432   :  { %v799_v22 = vadd.f32 %v798_v21, %v711_v50 }
 0x433   :  { %822 = vst [vmem:[#allocation11 + $0x28] sm:$0xff] %v804_v0 }
 0x434   :  { %821 = vst [vmem:[#allocation11 + $0x20] sm:$0xff] %v799_v22  ;;  %v1115_v57 = vpop.f32.mrb[14].mxu1 }
 0x435   :  { %v814_v59 = vadd.f32 %v1115_v57, %v711_v50  ;;  %v808_v23 = vpop.f32.mrb[15].mxu1 }
 0x436   :  { %v809_v14 = vadd.f32 %v808_v23, %v711_v50 }
 0x437   :  { %824 = vst [vmem:[#allocation11 + $0x38] sm:$0xff] %v814_v59 }
 0x438   :  { %823 = vst [vmem:[#allocation11 + $0x30] sm:$0xff] %v809_v14 }
 0x439   :  { %1421 = shalt.err (!%p1418_p2)
}
 0x43a   :  { %s1422_s14 = scalar_lea.hbm %s1755_s6, 1024 }
 0x43b   :  { %p1423_p3 = scmp.ne.s32.totalorder %s1755_s6, %s1422_s14  ;;  %p1426_p4 = scmp.lt.u32.totalorder %s1422_s14, %s1755_s6 }
 0x43d   :  { %p1428_p5 = pnand %p1426_p4, %p1423_p3 }
 0x43f   :  { %1431 = shalt.err (!%p1428_p5)
}
 0x440   :  { %836 = dma.vmem_to_hbm [thread:$0]  %s831_s3, 1024, %s1755_s6, [#allocation4], %s1442_s9, %s1442_s9, %s1443_s10  }
 0x441   :  { %1438 = dma.done.wait [#allocation4], 1024  }
 0x442   :  { %1439 = vsyncadd [#allocation4], 4294966272 }
 0x443   :  { %840 = vsyncpa [#allocation3], 1 }
 0x444   :  { %841 = vsyncpa [#allocation6], 1 }
 0x445   :  { %842 = vsyncpa [#allocation9], 1 }
 0x446   :  { %843 = vsyncpa [#allocation4], 1 }

</bundles_post_ra>
